<compile_context>
chip_gen: v7x
topology: tpu7x:2x2x1
jax: 0.10.0
libtpu: 0.0.40
codegen_flags: <defaults>
</compile_context>

<pallas_src>
import functools

import jax
import jax.numpy as jnp
import numpy as np
from jax.experimental import pallas as pl
from jax.experimental.pallas import tpu as pltpu


def _round_up(x, m):
    return (x + m - 1) // m * m


def _tpu_kind_and_vmem():
    """Best-effort chip kind string + physical per-core VMEM capacity (bytes)."""
    kind = ""
    try:
        kind = jax.devices()[0].device_kind.lower()
    except Exception:
        pass
    cap = None
    try:
        cap = int(pltpu.get_tpu_info().vmem_capacity_bytes)
    except Exception:
        cap = None
    if cap is None:
        # v5e / v6e (and v5p) have 128 MiB per TensorCore; be conservative otherwise.
        cap = 128 * 1024 * 1024 if ("v5" in kind or "v6" in kind) else 64 * 1024 * 1024
    return kind, cap


def _fits_vmem(cin_p, cout_rows, k, th, tl, budget):
    """Rough per-step VMEM residency (bytes) for the chosen tiling."""
    x_b = 2 * cin_p * tl * 2              # main input tile, double-buffered, bf16
    h_b = 2 * cin_p * th * 2              # narrow halo slab, double-buffered, bf16
    o_b = 2 * cout_rows * tl * 4          # output tile, double-buffered, f32
    w_b = cout_rows * k * cin_p * 2       # weight tile (resident when n_co == 1), bf16
    tmp = (cin_p * (tl + th) + k * cin_p * tl) * 2 + cout_rows * tl * 4  # xx + stacked + acc
    return x_b + h_b + o_b + w_b + tmp <= budget


def _choose_tl(cin_p, cout_rows, k, th, budget, max_tl, l_out):
    """Largest length tile that fits the VMEM budget, or None if nothing fits."""
    align = max(th, 128)                  # halo block-index math needs TH | TL
    lcap = _round_up(max(l_out, 1), align)
    cands = sorted({min(t, lcap) for t in (2048, 1024, 512, 256, 128)
                    if t % align == 0 and t <= max_tl}, reverse=True)
    if not cands:
        cands = [align]
    for tl in cands:
        if _fits_vmem(cin_p, cout_rows, k, th, tl, budget):
            return tl
    return None


def _convnorm_kernel(x_lo_ref, x_hi_ref, w_ref, b_ref, o_ref, stk_ref, *,
                     kernel_size, dilation, tl):
    # x_lo_ref: (1, Cin_p, TL)   bf16 — length tile j of the zero-padded input
    # x_hi_ref: (1, Cin_p, TH)   bf16 — narrow halo slab starting at element (j+1)*TL
    # w_ref:    (TCo, K*Cin_p)   bf16 — tap-major flattened weights
    # b_ref:    (TCo, 1)         f32
    # o_ref:    (1, TCo, TL)     output dtype
    # stk_ref:  (K*Cin_p, TL)    bf16 scratch — tap-folded operand cached across Cout tiles
    @pl.when(pl.program_id(2) == 0)
    def _():
        # Built once per (batch, length-tile); c (Cout tile) is innermost so the cache
        # is valid for every c > 0 of the same (b, j).
        # TODO(synk): the K unaligned lane-slices could use pltpu.roll (XLU) instead of
        # vld/vst copies if the load/store slots ever bind before the MXU.
        xx = jnp.concatenate([x_lo_ref[0], x_hi_ref[0]], axis=-1)      # (Cin_p, TL+TH)
        stk_ref[...] = jnp.concatenate(
            [xx[:, k * dilation:k * dilation + tl] for k in range(kernel_size)],
            axis=0)                                                     # (K*Cin_p, TL)

    acc = jnp.dot(w_ref[...], stk_ref[...],
                  preferred_element_type=jnp.float32)                   # (TCo, TL) f32
    o_ref[0] = (acc + b_ref[...]).astype(o_ref.dtype)


def _convnorm_k1_kernel(x_ref, w_ref, b_ref, o_ref):
    # kernel_size == 1: plain (TCo, Cin_p) @ (Cin_p, TL) matmul — no halo, no tap fold.
    acc = jnp.dot(w_ref[...], x_ref[0], preferred_element_type=jnp.float32)
    o_ref[0] = (acc + b_ref[...]).astype(o_ref.dtype)


def conv_norm_forward(x, weight, bias=None, *, stride=1, padding=None, dilation=1,
                      compute_dtype=jnp.bfloat16, out_dtype=None):
    """ConvNorm forward (PyTorch Conv1d semantics, NCL layout).

    x:      (B, Cin, L)      float32
    weight: (Cout, Cin, K)   PyTorch Conv1d weight layout
    bias:   (Cout,) or None
    """
    # TODO(synk): stride > 1 would need a strided lane gather in-kernel; not implemented.
    assert stride == 1, "only stride=1 supported in this kernel"
    B, Cin, L = x.shape
    Cout, Cin_w, K = weight.shape
    assert Cin_w == Cin and K >= 1 and dilation >= 1
    if padding is None:
        assert K % 2 == 1
        padding = int(dilation * (K - 1) / 2)
    if bias is None:
        bias = jnp.zeros((Cout,), jnp.float32)
    out_dtype = x.dtype if out_dtype is None else out_dtype

    halo = dilation * (K - 1)
    L_out = L + 2 * padding - halo
    assert L_out >= 1

    # ---- generation-aware tiling -----------------------------------------
    kind, vmem_cap = _tpu_kind_and_vmem()
    budget = int(vmem_cap * 0.38)             # tile-selection budget
    vmem_limit = int(vmem_cap * 0.50)         # compiler limit, consistent with the budget
    max_tl = 2048 if "v6" in kind else 1024   # 128 MiB VMEM on v6e -> bigger length tiles

    Cin_p = _round_up(Cin, 16)                # bf16 sublane pack
    Cout_p = _round_up(Cout, 128)             # lane-dense stores / clean Cout tiling
    TH = _round_up(halo, 128) if K > 1 else 0 # narrow halo slab width

    # Prefer keeping the whole weight resident (n_co == 1): weight/bias DMA'd once,
    # tap-fold shuffle runs exactly once per length tile, biggest MXU op per step.
    TCo, n_co = Cout_p, 1
    TL = _choose_tl(Cin_p, Cout_p, K, TH, budget, max_tl, L_out)
    if TL is None:
        TCo = 128 if "v5" in kind else (256 if Cout_p % 256 == 0 else 128)
        n_co = Cout_p // TCo
        TL = _choose_tl(Cin_p, TCo, K, TH, budget, max_tl, L_out)
        if TL is None:
            TL = max(TH, 128)                 # last resort; may exceed the soft budget

    n_l = -(-L_out // TL)
    L_out_p = n_l * TL
    L_tot = n_l * TL + TH                     # only the halo slab extra, not a full tile

    # ---- operand prep (bf16 for the MXU; padding sliced off afterwards) ---
    # TODO(synk): the zero-pad pass could be fused into the kernel with boundary lane
    # masks to save one extra HBM read+write of the (bf16) input.
    x_c = x.astype(compute_dtype)
    X = jnp.pad(x_c, ((0, 0), (0, Cin_p - Cin), (padding, L_tot - padding - L)))

    w_t = jnp.transpose(weight, (0, 2, 1))                         # (Cout, K, Cin)
    w_t = jnp.pad(w_t, ((0, Cout_p - Cout), (0, 0), (0, Cin_p - Cin)))
    W2 = w_t.reshape(Cout_p, K * Cin_p).astype(compute_dtype)      # tap-major flat
    b2 = jnp.pad(bias.astype(jnp.float32), (0, Cout_p - Cout)).reshape(Cout_p, 1)

    if K == 1:
        kernel = _convnorm_k1_kernel
        in_specs = [
            pl.BlockSpec((1, Cin_p, TL), lambda b, j, c: (b, 0, j)),
            pl.BlockSpec((TCo, Cin_p), lambda b, j, c: (c, 0)),
            pl.BlockSpec((TCo, 1), lambda b, j, c: (c, 0)),
        ]
        operands = (X, W2, b2)
        scratch = []
        dims = ("parallel", "parallel", "parallel")
    else:
        kernel = functools.partial(_convnorm_kernel, kernel_size=K,
                                   dilation=dilation, tl=TL)
        blocks_per_tile = TL // TH            # TH | TL by construction
        in_specs = [
            pl.BlockSpec((1, Cin_p, TL), lambda b, j, c: (b, 0, j)),          # tile j
            pl.BlockSpec((1, Cin_p, TH),                                       # halo slab
                         lambda b, j, c: (b, 0, (j + 1) * blocks_per_tile)),
            pl.BlockSpec((TCo, K * Cin_p), lambda b, j, c: (c, 0)),            # weights
            pl.BlockSpec((TCo, 1), lambda b, j, c: (c, 0)),                    # bias
        ]
        operands = (X, X, W2, b2)
        scratch = [pltpu.VMEM((K * Cin_p, TL), compute_dtype)]
        # c must iterate sequentially (innermost) so the scratch-cached `stacked`
        # built at c == 0 is valid for c > 0.
        dims = ("parallel", "parallel", "arbitrary")

    out_p = pl.pallas_call(
        kernel,
        out_shape=jax.ShapeDtypeStruct((B, Cout_p, L_out_p), out_dtype),
        grid_spec=pltpu.PrefetchScalarGridSpec(
            num_scalar_prefetch=0,
            grid=(B, n_l, n_co),
            in_specs=in_specs,
            out_specs=pl.BlockSpec((1, TCo, TL), lambda b, j, c: (b, c, j)),
            scratch_shapes=scratch,
        ),
        compiler_params=pltpu.CompilerParams(
            dimension_semantics=dims,
            vmem_limit_bytes=vmem_limit),
    )(*operands)

    return out_p[:, :Cout, :L_out]


def init_conv_norm_params(key, in_channels, out_channels, kernel_size,
                          w_init_gain="linear"):
    """Deterministic parameter init mirroring the PyTorch module's __init__."""
    kw, kb = jax.random.split(key)
    gain = 1.0  # torch.nn.init.calculate_gain('linear') == 1.0
    fan_in = in_channels * kernel_size
    fan_out = out_channels * kernel_size
    bound_w = gain * np.sqrt(6.0 / (fan_in + fan_out))   # xavier_uniform_
    weight = jax.random.uniform(
        kw, (out_channels, in_channels, kernel_size),
        minval=-bound_w, maxval=bound_w, dtype=jnp.float32)
    bound_b = 1.0 / np.sqrt(fan_in)                      # PyTorch Conv1d bias default
    bias = jax.random.uniform(
        kb, (out_channels,), minval=-bound_b, maxval=bound_b, dtype=jnp.float32)
    return weight, bias


if __name__ == "__main__":
    key = jax.random.PRNGKey(0)
    k_x, k_p1, k_p2, k_p3 = jax.random.split(key, 4)

    def reference(xv, wv, bv, pad, dil):
        # Reference on bf16-rounded operands (the kernel computes bf16 x bf16 -> f32).
        x_r = xv.astype(jnp.bfloat16).astype(jnp.float32)
        w_r = wv.astype(jnp.bfloat16).astype(jnp.float32)
        out = jax.lax.conv_general_dilated(
            x_r, w_r, window_strides=(1,), padding=[(pad, pad)],
            rhs_dilation=(dil,), dimension_numbers=("NCH", "OIH", "NCH"),
            precision=jax.lax.Precision.HIGHEST)
        return out + bv[None, :, None]

    B, Cin, L = 2, 4, 16
    x = jax.random.normal(k_x, (B, Cin, L), dtype=jnp.float32)

    configs = [(8, 3, 1), (8, 5, 2), (8, 1, 1)]   # (Cout, K, dilation)
    for (Cout, K, dil), kp in zip(configs, (k_p1, k_p2, k_p3)):
        weight, bias = init_conv_norm_params(kp, Cin, Cout, K)
        pad = int(dil * (K - 1) / 2)
        out = conv_norm_forward(x, weight, bias, stride=1, padding=None, dilation=dil)
        out = jax.block_until_ready(out)
        L_out = L + 2 * pad - dil * (K - 1)
        assert out.shape == (B, Cout, L_out), (out.shape, (B, Cout, L_out))
        ref = reference(x, weight, bias, pad, dil)
        np.testing.assert_allclose(np.asarray(out), np.asarray(ref),
                                   rtol=2e-3, atol=2e-3)

    print("KERNEL_OK")
</pallas_src>

<mosaic_0001>
module attributes {stable_mosaic.version = 11 : i64} {
  func.func @_convnorm_kernel(%arg0: i32, %arg1: i32, %arg2: i32, %arg3: memref<1x16x128xbf16, #tpu.memory_space<vmem>>, %arg4: memref<1x16x128xbf16, #tpu.memory_space<vmem>>, %arg5: memref<128x48xbf16, #tpu.memory_space<vmem>>, %arg6: memref<128x1xf32, #tpu.memory_space<vmem>>, %arg7: memref<1x128x128xf32, #tpu.memory_space<vmem>>, %arg8: memref<48x128xbf16, #tpu.memory_space<vmem>>) attributes {dimension_semantics = [#tpu.dimension_semantics<parallel>, #tpu.dimension_semantics<parallel>, #tpu.dimension_semantics<arbitrary>], iteration_bounds = array<i64: 2, 1, 1>, scalar_prefetch = 0 : i64, scratch_operands = 1 : i64, tpu.core_type = #tpu.core_type<tc>, window_params = [{transform_indices = @transform_0, window_bounds = array<i64: 1, 16, 128>}, {transform_indices = @transform_1, window_bounds = array<i64: 1, 16, 128>}, {transform_indices = @transform_2, window_bounds = array<i64: 128, 48>}, {transform_indices = @transform_3, window_bounds = array<i64: 128, 1>}, {transform_indices = @transform_4, window_bounds = array<i64: 1, 128, 128>}]} {
    %c0_i32 = arith.constant 0 : i32
    %0 = arith.cmpi eq, %arg2, %c0_i32 : i32
    %1 = arith.extui %0 : i1 to i32
    %c0_i32_0 = arith.constant 0 : i32
    %2 = arith.cmpi ne, %1, %c0_i32_0 : i32
    scf.if %2 {
      %c0_9 = arith.constant 0 : index
      %c0_10 = arith.constant 0 : index
      %c0_11 = arith.constant 0 : index
      %12 = vector.load %arg3[%c0_9, %c0_10, %c0_11] : memref<1x16x128xbf16, #tpu.memory_space<vmem>>, vector<1x16x128xbf16>
      %13 = vector.shape_cast %12 : vector<1x16x128xbf16> to vector<16x128xbf16>
      %c0_12 = arith.constant 0 : index
      %c0_13 = arith.constant 0 : index
      %c0_14 = arith.constant 0 : index
      %14 = vector.load %arg4[%c0_12, %c0_13, %c0_14] : memref<1x16x128xbf16, #tpu.memory_space<vmem>>, vector<1x16x128xbf16>
      %15 = vector.shape_cast %14 : vector<1x16x128xbf16> to vector<16x128xbf16>
      %16 = tpu.concatenate %13, %15 in 1 : vector<16x128xbf16>, vector<16x128xbf16> -> vector<16x256xbf16>
      %17 = vector.extract_strided_slice %16 {offsets = [0, 0], sizes = [16, 128], strides = [1, 1]} : vector<16x256xbf16> to vector<16x128xbf16>
      %18 = vector.extract_strided_slice %16 {offsets = [0, 1], sizes = [16, 128], strides = [1, 1]} : vector<16x256xbf16> to vector<16x128xbf16>
      %19 = vector.extract_strided_slice %16 {offsets = [0, 2], sizes = [16, 128], strides = [1, 1]} : vector<16x256xbf16> to vector<16x128xbf16>
      %20 = tpu.concatenate %17, %18, %19 in 0 : vector<16x128xbf16>, vector<16x128xbf16>, vector<16x128xbf16> -> vector<48x128xbf16>
      %c0_15 = arith.constant 0 : index
      %c0_16 = arith.constant 0 : index
      %21 = vector.load %arg8[%c0_15, %c0_16] : memref<48x128xbf16, #tpu.memory_space<vmem>>, vector<48x128xbf16>
      tpu.vector_store %arg8[%c0_15, %c0_16], %20 {strides = array<i32>} : memref<48x128xbf16, #tpu.memory_space<vmem>>, vector<48x128xbf16>,
    } else {
    }
    %c0 = arith.constant 0 : index
    %c0_1 = arith.constant 0 : index
    %3 = vector.load %arg5[%c0, %c0_1] : memref<128x48xbf16, #tpu.memory_space<vmem>>, vector<128x48xbf16>
    %c0_2 = arith.constant 0 : index
    %c0_3 = arith.constant 0 : index
    %4 = vector.load %arg8[%c0_2, %c0_3] : memref<48x128xbf16, #tpu.memory_space<vmem>>, vector<48x128xbf16>
    %cst = arith.constant dense<0.000000e+00> : vector<128x128xf32>
    %5 = tpu.matmul %3, %4, %cst {dimension_numbers = #tpu.dot_dimension_numbers<[1], [0], [0], [1], [0, 0, 1, 1], [], []>} : vector<128x48xbf16>, vector<48x128xbf16>, vector<128x128xf32> -> vector<128x128xf32>
    %c0_4 = arith.constant 0 : index
    %c0_5 = arith.constant 0 : index
    %6 = vector.load %arg6[%c0_4, %c0_5] : memref<128x1xf32, #tpu.memory_space<vmem>>, vector<128x1xf32>
    %7 = vector.broadcast %6 : vector<128x1xf32> to vector<128x128xf32>
    %8 = arith.addf %5, %7 : vector<128x128xf32>
    %c0_6 = arith.constant 0 : index
    %c0_7 = arith.constant 0 : index
    %c0_8 = arith.constant 0 : index
    %9 = vector.load %arg7[%c0_6, %c0_7, %c0_8] : memref<1x128x128xf32, #tpu.memory_space<vmem>>, vector<1x128x128xf32>
    %10 = vector.shape_cast %9 : vector<1x128x128xf32> to vector<128x128xf32>
    %11 = vector.shape_cast %8 : vector<128x128xf32> to vector<1x128x128xf32>
    tpu.vector_store %arg7[%c0_6, %c0_7, %c0_8], %11 {strides = array<i32>} : memref<1x128x128xf32, #tpu.memory_space<vmem>>, vector<1x128x128xf32>,
    return
  }
  func.func @transform_0(%arg0: i32, %arg1: i32, %arg2: i32) -> (i32, i32, i32) {
    %c0_i32 = arith.constant 0 : i32
    %c0_i32_0 = arith.constant 0 : i32
    return %arg0, %c0_i32, %arg1 : i32, i32, i32
  }
  func.func @transform_1(%arg0: i32, %arg1: i32, %arg2: i32) -> (i32, i32, i32) {
    %c1_i32 = arith.constant 1 : i32
    %0 = arith.addi %arg1, %c1_i32 : i32
    %c1_i32_0 = arith.constant 1 : i32
    %1 = arith.muli %0, %c1_i32_0 : i32
    %c0_i32 = arith.constant 0 : i32
    %c0_i32_1 = arith.constant 0 : i32
    return %arg0, %c0_i32, %1 : i32, i32, i32
  }
  func.func @transform_2(%arg0: i32, %arg1: i32, %arg2: i32) -> (i32, i32) {
    %c0_i32 = arith.constant 0 : i32
    %c0_i32_0 = arith.constant 0 : i32
    return %arg2, %c0_i32 : i32, i32
  }
  func.func @transform_3(%arg0: i32, %arg1: i32, %arg2: i32) -> (i32, i32) {
    %c0_i32 = arith.constant 0 : i32
    %c0_i32_0 = arith.constant 0 : i32
    return %arg2, %c0_i32 : i32, i32
  }
  func.func @transform_4(%arg0: i32, %arg1: i32, %arg2: i32) -> (i32, i32, i32) {
    %c0_i32 = arith.constant 0 : i32
    return %arg0, %arg2, %arg1 : i32, i32, i32
  }
}

</mosaic_0001>

<bundles_post_ra>
// kernel: tpu_custom_call.1
= control target key start
LH: loop header
LB: loop body
LE: loop exit
PB: predicated region body
PF: predicated region fallthrough
CT: control target
= control target key end

     0   :  { %9 = vsyncpa [#allocation6], 0  ;;  %s1371_s0 = inlined_call_operand.vmem [shape: bf16[2,16,256], index: 0, kind: input, shape index: {}]   ;;  %s1372_s1 = inlined_call_operand.vmem [shape: bf16[2,16,256], index: 1, kind: input, shape index: {}]   ;;  %s1373_s2 = inlined_call_operand.vmem [shape: bf16[128,48], index: 2, kind: input, shape index: {}]   ;;  %s1374_s3 = inlined_call_operand.vmem [shape: f32[128,1], index: 3, kind: input, shape index: {}]   ;;  %s1375_s4 = inlined_call_operand.hbm [shape: f32[2,128,128], index: 4, kind: output, shape index: {}]  }
   0x1   :  { %11 = vsyncpa [#allocation6 + $0x1], 0  ;;  %s1135_s15 = smov 0   ;;  %s1137_s16 = smov 0  }
   0x2   :  { %s1139_s17 = smov 0   ;;  %s1141_s18 = smov 0  }
   0x3   :  { %s1143_s19 = smov 0   ;;  %s1145_s20 = smov 0  }
   0x4 LB: > { %s869_s21 = sadd.s32 4294967295, %s1102_s20   ;;  %s870_s22 = sadd.s32 4294967294, %s1102_s20   ;;  %s1102_s20 = sphi %s1145_s20, %s17_s20   ;;  %s1098_s19 = sphi %s1143_s19, %s1383_s19   ;;  %s1094_s18 = sphi %s1141_s18, %s1382_s18   ;;  %s1090_s17 = sphi %s1139_s17, %s1381_s17   ;;  %s1086_s16 = sphi %s1137_s16, %s1380_s16   ;;  %s1082_s15 = sphi %s1135_s15, %s1379_s15  }
   0x5   : > { %s36_s23 = sadd.s32 1, %s1098_s19  ;;  %s45_s24 = sadd.s32 1, %s1090_s17 }
   0x6   : > { %p38_p0 = scmp.ge.s32.totalorder %s36_s23, 2  ;;  %p52_p1 = scmp.ne.s32.totalorder %s1090_s17, %s1086_s16 }
   0x7   : > { %p53_p2 = scmp.eq.s32.totalorder %s1102_s20, 0  ;;  %p168_p3 = scmp.eq.s32.totalorder %s869_s21, 1 }
   0x8   : > { %s1385_s23 = smov (%p38_p0, %s36_s23), 0  ;;  %p173_p6 = scmp.ne.s32.totalorder %s1086_s16, %s1082_s15 }
   0x9   : > { %p1174_p4 = por %p53_p2, %p52_p1  ;;  %p1178_p5 = por %p168_p3, %p52_p1 }
   0xa   : > { %s40_s27 = ssub.s32 %s1098_s19, %s1385_s23  ;;  %p174_p8 = scmp.eq.s32.totalorder %s870_s22, 1 }
   0xb   : > { %p43_p7 = scmp.eq.s32.totalorder %s40_s27, 0  ;;  %p874_p10 = scmp.ge.s32.totalorder %s1102_s20, 2 }
   0xc   : > { %p1189_p9 = por %p174_p8, %p173_p6 }
   0xd   : > { %s1187_s28 = scalar_select %p43_p7, %s1090_s17, %s45_s24  }
   0xe   : > { %208 = sbr.rel (%p874_p10) target bundleno = 35 (0x23), region = 24 }
  0x15   : > { %211 = sbr.rel (!%p1174_p4) target bundleno = 28 (0x1c), region = 28  ;;  %s213_s30 = sand.u32 (%p1174_p4), 1, %s1090_s17  }
  0x16   : > { %s910_s5 = sshll.u32 (%p1174_p4), %s1098_s19, 4  ;;  %s875_s6 = sshll.u32 (%p1174_p4), %s213_s30, 3 }
  0x17   : > { %s219_s9 = scalar_lea.vmem (%p1174_p4), %s1371_s0, %s910_s5  ;;  %s215_s10 = scalar_lea.vmem (%p1174_p4), [#allocation3], %s875_s6 }
  0x18   : > { %v235_v0 = vld [vmem:[%s219_s9] sm:$0xf] (%p1174_p4)  ;;  %v237_v1 = vld [vmem:[%s219_s9 + $0x8] sm:$0xf] (%p1174_p4) }
  0x19   : > { %236 = vst [vmem:[%s215_s10] sm:$0xf] (%p1174_p4), %v235_v0  ;;  %238 = vst [vmem:[%s215_s10 + $0x4] sm:$0xf] (%p1174_p4), %v237_v1 }
  0x1c PF: > { %265 = sbr.rel (!%p1174_p4) target bundleno = 35 (0x23), region = 69  ;;  %s267_s11 = sand.u32 (%p1174_p4), 1, %s1090_s17  }
  0x1d   : > { %s911_s12 = sshll.u32 (%p1174_p4), %s1098_s19, 4  ;;  %s878_s13 = sshll.u32 (%p1174_p4), %s267_s11, 3 }
  0x1e   : > { %s772_s22 = scalar_lea.vmem (%p1174_p4), %s1372_s1, %s911_s12  ;;  %s269_s24 = scalar_lea.vmem (%p1174_p4), [#allocation4], %s878_s13 }
  0x1f   : > { %v881_v2 = vld [vmem:[%s772_s22 + $0x4] sm:$0xf] (%p1174_p4)  ;;  %v882_v3 = vld [vmem:[%s772_s22 + $0xc] sm:$0xf] (%p1174_p4) }
  0x20   : > { %291 = vst [vmem:[%s269_s24] sm:$0xf] (%p1174_p4), %v881_v2  ;;  %293 = vst [vmem:[%s269_s24 + $0x4] sm:$0xf] (%p1174_p4), %v882_v3 }
  0x23 PF: > { %p883_p11 = scmp.ge.s32.totalorder %s1102_s20, 1  ;;  %p319_p12 = scmp.lt.s32.totalorder %s1102_s20, 3 }
  0x25   : > { %p320_p13 = pnand %p883_p11, %p319_p12 }
  0x26   : > { %s1213_s25 = sand.u32 (!%p320_p13), 1, %s1086_s16   ;;  %v1016_v4 = vld [vmem:[%s1373_s2] sm:$0xff] (!%p320_p13)   ;;  %vm578_vm0 = vcmask (!%p320_p13), 392192   ;;  %s1104_s9 = smov (!%p320_p13), 126   ;;  %v443_v8 = vld [vmem:[%s1374_s3 + $0x8] sm:$0xff] (!%p320_p13)  ;;  %v1106_v10 = vmov (!%p320_p13), 0  }
  0x27   : > { %323 = sbr.rel (%p320_p13) target bundleno = 410 (0x19a), region = 110  ;;  %s884_s27 = sshll.u32 (!%p320_p13), %s1213_s25, 3  ;;  %930 = vmatprep.mubr.msk.bf16.mxu0 (!%p320_p13), %vm578_vm0, %v1016_v4  ;;  %v1017_v6 = vld [vmem:[%s1373_s2 + $0x20] sm:$0xff] (!%p320_p13)   ;;  %1013 = vset.pattern.permute.xlu1 (!%p320_p13), %v1106_v10  ;;  %v444_v11 = vld [vmem:[%s1374_s3 + $0x10] sm:$0xff] (!%p320_p13)  ;;  %v445_v12 = vld [vmem:[%s1374_s3 + $0x18] sm:$0xff] (!%p320_p13)  ;;  %vm410_vm1 = vcmask (!%p320_p13), 1039360  }
  0x28   : > { %s328_s6 = scalar_lea.vmem (!%p320_p13), [#allocation3], %s884_s27  ;;  %s1105_s10 = smov (!%p320_p13), 127   ;;  %938 = vmatprep.mubr.msk.bf16.mxu1 (!%p320_p13), %vm578_vm0, %v1017_v6  ;;  %v442_v9 = vld [vmem:[%s1374_s3] sm:$0xff] (!%p320_p13)  ;;  %1012 = vset.pattern.permute.xlu0 (!%p320_p13), %v1106_v10  ;;  %v447_v14 = vld [vmem:[%s1374_s3 + $0x28] sm:$0xff] (!%p320_p13)  ;;  %v448_v15 = vld [vmem:[%s1374_s3 + $0x30] sm:$0xff] (!%p320_p13)  ;;  %vm417_vm2 = vcmask (!%p320_p13), 1031168  }
  0x29   : > { %v1014_v5 = vld [vmem:[%s328_s6] sm:$0xff] (!%p320_p13)   ;;  %s335_s11 = scalar_lea.vmem (!%p320_p13), [#allocation4], %s884_s27  ;;  %v449_v16 = vld [vmem:[%s1374_s3 + $0x38] sm:$0xff] (!%p320_p13)  ;;  %v452_v19 = vld [vmem:[%s1374_s3 + $0x50] sm:$0xff] (!%p320_p13)  ;;  %s912_s13 = sshll.u32 (!%p320_p13), %s1094_s18, 11 }
  0x2a   : > { %413 = vrot.lane.b32.xlu1 (!%p320_p13), %v1014_v5, %s1104_s9  ;;  %406 = vrot.lane.b32.xlu0 (!%p320_p13), %v1014_v5, %s1105_s10  ;;  %v1015_v7 = vld [vmem:[%s335_s11] sm:$0xff] (!%p320_p13)   ;;  %v446_v13 = vld [vmem:[%s1374_s3 + $0x20] sm:$0xff] (!%p320_p13)  ;;  %s886_s11 = sshll.u32 (!%p320_p13), %s1213_s25, 7  ;;  %s1314_s22 = scalar_lea.hbm (!%p320_p13), %s1375_s4, %s912_s13 }
  0x2b   : > { %924 = vmatprep.subr.bf16.mxu0 (!%p320_p13), %v1014_v5  ;;  %946 = vmatprep.subr.bf16.mxu1 (!%p320_p13), %v1014_v5  ;;  %v450_v17 = vld [vmem:[%s1374_s3 + $0x40] sm:$0xff] (!%p320_p13)  ;;  %v451_v18 = vld [vmem:[%s1374_s3 + $0x48] sm:$0xff] (!%p320_p13)  ;;  %v453_v20 = vld [vmem:[%s1374_s3 + $0x58] sm:$0xff] (!%p320_p13)  ;;  %s1297_s12 = scalar_lea.vmem (!%p320_p13), [#allocation5], %s886_s11  ;;  %s717_s24 = scalar_lea.sflag (!%p320_p13), [#allocation6], %s1213_s25 }
  0x2c   : > { %925 = vmatpush3.bf16.msra.mxu0 (!%p320_p13), %v1014_v5  ;;  %949 = vmatpush3.bf16.msra.mxu1 (!%p320_p13), %v1014_v5  ;;  %v454_v21 = vld [vmem:[%s1374_s3 + $0x60] sm:$0xff] (!%p320_p13)  ;;  %v455_v22 = vld [vmem:[%s1374_s3 + $0x68] sm:$0xff] (!%p320_p13)  ;;  %v456_v23 = vld [vmem:[%s1374_s3 + $0x70] sm:$0xff] (!%p320_p13)  ;;  %s733_s14 = sshll.u32 (!%p320_p13), %s1297_s12, 4  ;;  %s1107_s30 = smov (!%p320_p13), [#allocation5]   ;;  %s1316_s14 = int_to_ptr.vmem [resolvable:$true] %s733_s14 }
  0x2d   : > { %v457_v24 = vld [vmem:[%s1374_s3 + $0x78] sm:$0xff] (!%p320_p13)  ;;  %v1018_v31 = vld [vmem:[%s1373_s2 + $0x8] sm:$0xff] (!%p320_p13)   ;;  %v1020_v33 = vld [vmem:[%s1373_s2 + $0x10] sm:$0xff] (!%p320_p13)   ;;  %s1024_s27 = scalar_lea.vmem (!%p320_p13), %s1316_s14, 2048  ;;  %s1028_s5 = sshll.u32 (!%p320_p13), %s1107_s30, 4  ;;  %s1029_s5 = int_to_ptr.vmem [resolvable:$false] %s1028_s5 }
  0x2e   : > { %415 = vrot.lane.b32.xlu1 %v1015_v7, %s1104_s9  ;;  %408 = vrot.lane.b32.xlu0 %v1015_v7, %s1105_s10  ;;  %v1019_v32 = vld [vmem:[%s1373_s2 + $0x28] sm:$0xff]   ;;  %v1021_v34 = vld [vmem:[%s1373_s2 + $0x30] sm:$0xff]   ;;  %p1025_p0 = scmp.ne.s32.totalorder %s1316_s14, %s1024_s27  ;;  %s1030_s6 = scalar_lea.vmem %s1029_s5, 4096 }
  0x2f   : > { %v1022_v35 = vld [vmem:[%s1373_s2 + $0x18] sm:$0xff]   ;;  %p1031_p3 = scmp.lt.s32.totalorder %s1316_s14, %s1029_s5  ;;  %p1032_p4 = scmp.lt.s32.totalorder %s1030_s6, %s1024_s27 }
  0x30   : > { %v1023_v36 = vld [vmem:[%s1373_s2 + $0x38] sm:$0xff]   ;;  %p1026_p1 = pnand %p1025_p0, %p1178_p5 }
  0x31   : > { %p1033_p6 = por %p1032_p4, %p1031_p3 }
  0x32   : > { %465 = vperm.xlu1 %1013, %v443_v8   ;;  %460 = vperm.xlu0 %1012, %v442_v9   ;;  %p1027_p2 = pneg %p1026_p1 }
  0x34   : > { %p1034_p7 = pnand %p1033_p6, %p1027_p2 }
  0x36   : > { %470 = vperm.xlu1 %1013, %v444_v11   ;;  %475 = vperm.xlu0 %1012, %v445_v12  }
  0x3a   : > { %480 = vperm.xlu1 %1013, %v446_v13   ;;  %485 = vperm.xlu0 %1012, %v447_v14  }
  0x3e   : > { %490 = vperm.xlu1 %1013, %v448_v15   ;;  %495 = vperm.xlu0 %1012, %v449_v16  }
  0x42   : > { %500 = vperm.xlu1 %1013, %v450_v17   ;;  %505 = vperm.xlu0 %1012, %v451_v18  }
  0x46   : > { %510 = vperm.xlu1 %1013, %v452_v19   ;;  %515 = vperm.xlu0 %1012, %v453_v20  }
  0x4a   : > { %520 = vperm.xlu1 %1013, %v454_v21   ;;  %525 = vperm.xlu0 %1012, %v455_v22  }
  0x4e   : > { %530 = vperm.xlu1 %1013, %v456_v23   ;;  %535 = vperm.xlu0 %1012, %v457_v24  }
  0x9c   : > { %v414_v25 = vpop.permute.xlu1 %413  ;;  %v407_v26 = vpop.permute.xlu0 %406 }
  0xa0   : > { %v416_v27 = vpop.permute.xlu1 %415  ;;  %v409_v28 = vpop.permute.xlu0 %408 }
  0xa1   : > { %v411_v29 = vsel %vm410_vm1, %v407_v26, %v409_v28  ;;  %v418_v30 = vsel %vm417_vm2, %v414_v25, %v416_v27 }
  0xa2   : > { %926 = vmatprep.subr.bf16.mxu0 %v411_v29  ;;  %947 = vmatprep.subr.bf16.mxu1 %v411_v29 }
  0xa3   : > { %927 = vmatpush3.bf16.msra.mxu0 %v411_v29  ;;  %950 = vmatpush3.bf16.msra.mxu1 %v411_v29 }
  0xa4   : > { %928 = vmatprep.subr.bf16.mxu0 %v418_v30  ;;  %948 = vmatprep.subr.bf16.mxu1 %v418_v30 }
  0xa7   : > { %929 = vmatpush3.bf16.msra.mxu0 %v418_v30  ;;  %951 = vmatpush3.bf16.msra.mxu1 %v418_v30 }
  0xaa   : > { %931 = vmatmul.mubr.msk.bf16.vlgmr.msra.gmra.mrb[0].mxu0 %vm578_vm0, %v1018_v31  ;;  %939 = vmatmul.mubr.msk.bf16.vlgmr.msra.gmra.mrb[0].mxu1 %vm578_vm0, %v1019_v32 }
  0xab   : > { %934 = vmatprep.mubr.msk.bf16.mxu0 %vm578_vm0, %v1020_v33  ;;  %942 = vmatprep.mubr.msk.bf16.mxu1 %vm578_vm0, %v1021_v34 }
  0xb1   : > { %v466_v37 = vpop.permute.xlu1 %465  ;;  %v461_v38 = vpop.permute.xlu0 %460 }
  0xb2   : > { %935 = vmatmul.mubr.msk.bf16.gmra.mrb[4].mxu0 %vm578_vm0, %v1022_v35  ;;  %943 = vmatmul.mubr.msk.bf16.gmra.mrb[4].mxu1 %vm578_vm0, %v1023_v36 }
  0xb5   : > { %v471_v39 = vpop.permute.xlu1 %470  ;;  %v476_v40 = vpop.permute.xlu0 %475 }
  0xb9   : > { %v481_v41 = vpop.permute.xlu1 %480  ;;  %v486_v42 = vpop.permute.xlu0 %485 }
  0xbd   : > { %v491_v43 = vpop.permute.xlu1 %490  ;;  %v496_v44 = vpop.permute.xlu0 %495 }
  0xc1   : > { %v501_v45 = vpop.permute.xlu1 %500  ;;  %v506_v46 = vpop.permute.xlu0 %505 }
  0xc5   : > { %v511_v47 = vpop.permute.xlu1 %510  ;;  %v516_v48 = vpop.permute.xlu0 %515 }
  0xc9   : > { %v521_v49 = vpop.permute.xlu1 %520  ;;  %v526_v50 = vpop.permute.xlu0 %525 }
  0xcd   : > { %v531_v3 = vpop.permute.xlu1 %530  ;;  %v536_v4 = vpop.permute.xlu0 %535 }
 0x17d   : > { %v932_v51 = vpop.f32.mrb[0].mxu0  ;;  %v940_v52 = vpop.f32.mrb[0].mxu1 }
 0x17e   : > { %v646_v53 = vadd.f32 %v932_v51, %v471_v39  ;;  %v678_v54 = vadd.f32 %v940_v52, %v511_v47  ;;  %v637_v55 = vpop.f32.mrb[1].mxu0  ;;  %v669_v56 = vpop.f32.mrb[1].mxu1 }
 0x17f   : > { %v638_v57 = vadd.f32 %v637_v55, %v461_v38  ;;  %v670_v58 = vadd.f32 %v669_v56, %v501_v45  ;;  %v933_v59 = vpop.f32.mrb[2].mxu0  ;;  %v941_v60 = vpop.f32.mrb[2].mxu1 }
 0x180   : > { %702 = vst [vmem:[%s1297_s12 + $0x10] sm:$0xff] %v646_v53  ;;  %710 = vst [vmem:[%s1297_s12 + $0x50] sm:$0xff] %v678_v54  ;;  %v649_v61 = vadd.f32 %v933_v59, %v476_v40  ;;  %v681_v62 = vadd.f32 %v941_v60, %v516_v48  ;;  %v640_v63 = vpop.f32.mrb[3].mxu0  ;;  %v672_v0 = vpop.f32.mrb[3].mxu1 }
 0x181   : > { %700 = vst [vmem:[%s1297_s12] sm:$0xff] %v638_v57  ;;  %708 = vst [vmem:[%s1297_s12 + $0x40] sm:$0xff] %v670_v58  ;;  %v641_v1 = vadd.f32 %v640_v63, %v466_v37  ;;  %v673_v2 = vadd.f32 %v672_v0, %v506_v46 }
 0x182   : > { %703 = vst [vmem:[%s1297_s12 + $0x18] sm:$0xff] %v649_v61  ;;  %711 = vst [vmem:[%s1297_s12 + $0x58] sm:$0xff] %v681_v62 }
 0x183   : > { %701 = vst [vmem:[%s1297_s12 + $0x8] sm:$0xff] %v641_v1  ;;  %709 = vst [vmem:[%s1297_s12 + $0x48] sm:$0xff] %v673_v2 }
 0x185   : > { %v936_v5 = vpop.f32.mrb[4].mxu0  ;;  %v944_v6 = vpop.f32.mrb[4].mxu1 }
 0x186   : > { %v662_v7 = vadd.f32 %v936_v5, %v491_v43  ;;  %v694_v8 = vadd.f32 %v944_v6, %v531_v3  ;;  %v653_v9 = vpop.f32.mrb[5].mxu0  ;;  %v685_v10 = vpop.f32.mrb[5].mxu1 }
 0x187   : > { %v654_v11 = vadd.f32 %v653_v9, %v481_v41  ;;  %v686_v12 = vadd.f32 %v685_v10, %v521_v49  ;;  %v937_v13 = vpop.f32.mrb[6].mxu0  ;;  %v945_v14 = vpop.f32.mrb[6].mxu1 }
 0x188   : > { %706 = vst [vmem:[%s1297_s12 + $0x30] sm:$0xff] %v662_v7  ;;  %714 = vst [vmem:[%s1297_s12 + $0x70] sm:$0xff] %v694_v8  ;;  %v665_v15 = vadd.f32 %v937_v13, %v496_v44  ;;  %v697_v16 = vadd.f32 %v945_v14, %v536_v4  ;;  %v656_v17 = vpop.f32.mrb[7].mxu0  ;;  %v688_v18 = vpop.f32.mrb[7].mxu1 }
 0x189   : > { %704 = vst [vmem:[%s1297_s12 + $0x20] sm:$0xff] %v654_v11  ;;  %712 = vst [vmem:[%s1297_s12 + $0x60] sm:$0xff] %v686_v12  ;;  %v657_v19 = vadd.f32 %v656_v17, %v486_v42  ;;  %v689_v20 = vadd.f32 %v688_v18, %v526_v50 }
 0x18a   : > { %707 = vst [vmem:[%s1297_s12 + $0x38] sm:$0xff] %v665_v15  ;;  %715 = vst [vmem:[%s1297_s12 + $0x78] sm:$0xff] %v697_v16 }
 0x18b   : > { %705 = vst [vmem:[%s1297_s12 + $0x28] sm:$0xff] %v657_v19  ;;  %713 = vst [vmem:[%s1297_s12 + $0x68] sm:$0xff] %v689_v20 }
 0x18c   : > { %1037 = shalt.err (!%p1034_p7)
}
 0x18d   : > { %s1038_s7 = scalar_lea.hbm %s1314_s22, 2048  ;;  %s1042_s10 = scalar_lea.hbm %s1375_s4, 4096 }
 0x18e   : > { %p1039_p8 = scmp.ne.s32.totalorder %s1314_s22, %s1038_s7  ;;  %p1043_p13 = scmp.lt.u32.totalorder %s1314_s22, %s1375_s4 }
 0x18f   : > { %p1044_p0 = scmp.lt.u32.totalorder %s1042_s10, %s1038_s7  ;;  %p1046_p2 = scmp.lt.u32.totalorder %s1038_s7, %s1314_s22 }
 0x190   : > { %p1040_p11 = pnand %p1039_p8, %p1178_p5 }
 0x191   : > { %p1045_p1 = por %p1044_p0, %p1043_p13 }
 0x192   : > { %p1041_p12 = pneg %p1040_p11 }
 0x193   : > { %p1047_p3 = por %p1046_p2, %p1045_p1 }
 0x195   : > { %p1048_p4 = pnand %p1047_p3, %p1041_p12 }
 0x197   : > { %1051 = shalt.err (!%p1048_p4)
}
 0x198   : > { %s1108_s13 = smov 128   ;;  %s1109_s18 = smov 8  }
 0x199   : > { %952 = dma.vmem_to_hbm [thread:$0]  (%p1178_p5), %s1316_s14, 2048, %s1314_s22, %s717_s24, %s1108_s13, %s1108_s13, %s1109_s18  }
 0x19a PF: > { %s748_s21 = sand.u32 1, %s1082_s15   ;;  %p955_p6 = pnand %p874_p10, %p1189_p9 }
 0x19b   : > { %s749_s27 = scalar_lea.sflag [#allocation6], %s748_s21 }
 0x19c   : > { %1077 = dma.done.wait (!%p955_p6), %s749_s27, 2048  }
 0x19d   : > { %1079 = vsyncadd (!%p955_p6), %s749_s27, 4294965248  ;;  %s17_s20 = sadd.s32 1, %s1102_s20   ;;  %s1379_s15 = smov %s1086_s16 }
 0x19e   : > { %p14_p7 = scmp.ge.s32.totalorder %s17_s20, 4   ;;  %s1380_s16 = smov %s1090_s17 }
 0x19f   : > { %s1381_s17 = smov %s1187_s28  ;;  %s1382_s18 = smov %s1098_s19 }
 0x1a0   : > { %s1383_s19 = smov %s1385_s23  ;;  %16 = sbr.rel (!%p14_p7) target bundleno = 4 (0x4), region = 176 }
 0x1a7   :  { %754 = vsyncpa [#allocation6], 1 }
 0x1a8   :  { %756 = vsyncpa [#allocation6 + $0x1], 1 }

</bundles_post_ra>
